<compile_context>
chip_gen: v7x
topology: tpu7x:2x2x1
jax: 0.10.0
libtpu: 0.0.40
codegen_flags: <defaults>
</compile_context>

<pallas_src>
import functools

import jax
import jax.numpy as jnp
from jax.experimental import pallas as pl
from jax.experimental.pallas import tpu as pltpu


# ------------------------------------------------------------------ sizing helpers

def _round_up(x, m):
    return ((x + m - 1) // m) * m


def _vmem_budget():
    """(vmem_limit_bytes, max_tile_bytes, fused_slab_budget_bytes) per TPU generation."""
    cap = None
    try:
        cap = pltpu.get_tpu_info().vmem_capacity_bytes
    except Exception:
        cap = None
    if cap is not None and cap >= 100 * 1024 * 1024:
        # v5e / v6e: 128 MiB physical VMEM -> bigger tiles, bigger scoped limit.
        return 64 * 1024 * 1024, 8 * 1024 * 1024, 12 * 1024 * 1024
    # v7x (64 MiB physical) or unknown: stay conservative.
    return 32 * 1024 * 1024, 4 * 1024 * 1024, 6 * 1024 * 1024


def _pick_spatial_tile(spatial, channels, itemsize, requested, max_tile_bytes):
    """Return (tile, padded_spatial): tile is a multiple of 128 dividing padded_spatial."""
    s128 = _round_up(spatial, 128)
    if requested is not None:
        if requested % 128 != 0:
            raise ValueError("spatial_tile must be a multiple of 128")
        return requested, _round_up(spatial, requested)
    cap = max(128, (max_tile_bytes // (channels * itemsize)) // 128 * 128)
    if s128 <= cap:
        return s128, s128
    # Prefer a large 128-multiple divisor of the 128-rounded spatial (no extra padding).
    for cand in range(cap, 127, -128):
        if s128 % cand == 0 and cand >= min(cap, 512):
            return cand, s128
    # Otherwise pad up to a multiple of a big lane-dense tile.
    return cap, _round_up(spatial, cap)


# ------------------------------------------------------------------ forward

@functools.partial(jax.jit, static_argnames=("spatial_tile", "force_tiled"))
def channel_attention_forward(params, x, spatial_tile=None, force_tiled=False):
    """x: (B, C, H, W) (PyTorch NCHW layout). Returns attention * x, same shape/dtype."""
    B, C, H, W = x.shape
    S = H * W
    w1, b1, w2, b2 = params["w1"], params["b1"], params["w2"], params["b2"]
    Cr = w1.shape[0]
    inv_s = 1.0 / float(S)
    itemsize = jnp.dtype(x.dtype).itemsize

    vmem_limit, max_tile_bytes, fused_budget = _vmem_budget()
    xf = x.reshape(B, C, S)  # free reshape: NCHW -> (B, C, HW), spatial on the lane axis

    # Shared excitation MLP: pooled (C, 2) = [avg | max]  ->  sigmoid attention (C, 1).
    def excite(pooled, w1_ref, b1_ref, w2_ref, b2_ref):
        h = jnp.dot(w1_ref[...], pooled, preferred_element_type=jnp.float32) + b1_ref[...]
        h = jnp.maximum(h, 0.0)                                            # (Cr, 2)
        z = jnp.dot(w2_ref[...], h, preferred_element_type=jnp.float32) + b2_ref[...]
        return jax.nn.sigmoid(z[:, 0:1] + z[:, 1:2])                       # (C, 1)

    weight_specs = [
        pl.BlockSpec((Cr, C), lambda *_: (0, 0)),   # w1 (resident)
        pl.BlockSpec((Cr, 1), lambda *_: (0, 0)),   # b1
        pl.BlockSpec((C, Cr), lambda *_: (0, 0)),   # w2
        pl.BlockSpec((C, 1), lambda *_: (0, 0)),    # b2
    ]

    # ================= fused single-pass path (per-batch slab fits VMEM) ====================
    if (not force_tiled) and C * S * itemsize <= fused_budget:

        def fused_kernel(x_ref, w1_ref, b1_ref, w2_ref, b2_ref, o_ref):
            xt = x_ref[0].astype(jnp.float32)                              # (C, S)
            avg = jnp.sum(xt, axis=-1, keepdims=True) * inv_s              # (C, 1)
            mx = jnp.max(xt, axis=-1, keepdims=True)                       # (C, 1)
            col = jax.lax.broadcasted_iota(jnp.int32, (1, 2), 1)           # [[0, 1]]
            pooled = jnp.where(col == 0, avg, mx)                          # (C, 2)
            att = excite(pooled, w1_ref, b1_ref, w2_ref, b2_ref)           # (C, 1)
            o_ref[...] = (xt * att).astype(o_ref.dtype)[None]

        out = pl.pallas_call(
            fused_kernel,
            out_shape=jax.ShapeDtypeStruct((B, C, S), x.dtype),
            grid_spec=pltpu.PrefetchScalarGridSpec(
                num_scalar_prefetch=0,
                grid=(B,),
                in_specs=[pl.BlockSpec((1, C, S), lambda b: (b, 0, 0))] + weight_specs,
                out_specs=pl.BlockSpec((1, C, S), lambda b: (b, 0, 0)),
            ),
            compiler_params=pltpu.CompilerParams(
                dimension_semantics=("parallel",),
                vmem_limit_bytes=vmem_limit),
        )(xf, w1, b1, w2, b2)
        return out.reshape(B, C, H, W)

    # ================= tiled two-pass fallback (large H*W) ==================================
    ts, S_pad = _pick_spatial_tile(S, C, itemsize, spatial_tile, max_tile_bytes)
    n_s = S_pad // ts
    if S_pad != S:
        # Zero padding is exact for the mean (divide by true S); the max is masked in-kernel.
        xf = jnp.pad(xf, ((0, 0), (0, 0), (0, S_pad - S)))

    # ---- kernel 1: fused global avg/max pool + 1x1-conv MLP + sigmoid ----------------------
    def pool_excite_kernel(x_ref, w1_ref, b1_ref, w2_ref, b2_ref, att_ref, sum_sc, max_sc):
        s = pl.program_id(1)

        @pl.when(s == 0)
        def _():
            sum_sc[...] = jnp.zeros_like(sum_sc)
            max_sc[...] = jnp.full_like(max_sc, -jnp.inf)

        xt = x_ref[0].astype(jnp.float32)                                  # (C, ts)
        sum_sc[...] += jnp.sum(xt, axis=-1, keepdims=True)
        if S_pad != S:                                                     # mask padded tail
            lane = jax.lax.broadcasted_iota(jnp.int32, (C, ts), 1) + s * ts
            xt_for_max = jnp.where(lane < S, xt, -jnp.inf)
        else:
            xt_for_max = xt
        max_sc[...] = jnp.maximum(max_sc[...],
                                  jnp.max(xt_for_max, axis=-1, keepdims=True))

        @pl.when(s == pl.num_programs(1) - 1)
        def _():
            col = jax.lax.broadcasted_iota(jnp.int32, (1, 2), 1)
            pooled = jnp.where(col == 0, sum_sc[...] * inv_s, max_sc[...])  # (C, 2)
            att_ref[...] = excite(pooled, w1_ref, b1_ref, w2_ref, b2_ref)[None]

    att = pl.pallas_call(
        pool_excite_kernel,
        out_shape=jax.ShapeDtypeStruct((B, C, 1), jnp.float32),
        grid_spec=pltpu.PrefetchScalarGridSpec(
            num_scalar_prefetch=0,
            grid=(B, n_s),
            in_specs=[pl.BlockSpec((1, C, ts), lambda b, s: (b, 0, s))] + weight_specs,
            out_specs=pl.BlockSpec((1, C, 1), lambda b, s: (b, 0, 0)),
            scratch_shapes=[pltpu.VMEM((C, 1), jnp.float32),    # running sum
                            pltpu.VMEM((C, 1), jnp.float32)],   # running max
        ),
        compiler_params=pltpu.CompilerParams(
            dimension_semantics=("parallel", "arbitrary"),
            vmem_limit_bytes=vmem_limit),
    )(xf, w1, b1, w2, b2)

    # ---- kernel 2: broadcast scale  out = att * x  ------------------------------------------
    def scale_kernel(att_ref, x_ref, o_ref):
        o_ref[...] = (x_ref[...].astype(jnp.float32) * att_ref[...]).astype(o_ref.dtype)

    out = pl.pallas_call(
        scale_kernel,
        out_shape=jax.ShapeDtypeStruct((B, C, S_pad), x.dtype),
        grid_spec=pltpu.PrefetchScalarGridSpec(
            num_scalar_prefetch=0,
            grid=(B, n_s),
            in_specs=[
                pl.BlockSpec((1, C, 1), lambda b, s: (b, 0, 0)),    # per-batch attention
                pl.BlockSpec((1, C, ts), lambda b, s: (b, 0, s)),   # x tile
            ],
            out_specs=pl.BlockSpec((1, C, ts), lambda b, s: (b, 0, s)),
        ),
        compiler_params=pltpu.CompilerParams(
            dimension_semantics=("parallel", "parallel"),
            vmem_limit_bytes=vmem_limit),
    )(att, xf)

    if S_pad != S:
        out = out[:, :, :S]
    return out.reshape(B, C, H, W)


# ------------------------------------------------------------------ params

def init_params(key, channels, reduction_rate=16):
    """Conv2d(C, C//r, 1) and Conv2d(C//r, C, 1) weights, stored squeezed (kernel=1x1)."""
    cr = channels // reduction_rate
    assert cr >= 1, "channels must be >= reduction_rate"
    k1, k2, k3, k4 = jax.random.split(key, 4)

    def uinit(k, shape, fan_in):
        bound = 1.0 / float(fan_in) ** 0.5
        return jax.random.uniform(k, shape, jnp.float32, -bound, bound)

    return {
        "w1": uinit(k1, (cr, channels), channels),  # (C//r, C)
        "b1": uinit(k2, (cr, 1), channels),
        "w2": uinit(k3, (channels, cr), cr),        # (C, C//r)
        "b2": uinit(k4, (channels, 1), cr),
    }


# ------------------------------------------------------------------ main

if __name__ == "__main__":
    key = jax.random.PRNGKey(0)

    def reference(params, x):
        B, C, H, W = x.shape
        xf = x.reshape(B, C, H * W)
        avg = jnp.mean(xf, axis=-1)
        mx = jnp.max(xf, axis=-1)

        def mlp(p):
            h = jnp.maximum(p @ params["w1"].T + params["b1"][:, 0], 0.0)
            return h @ params["w2"].T + params["b2"][:, 0]

        att = jax.nn.sigmoid(mlp(avg) + mlp(mx))
        return x * att[:, :, None, None]

    def check(out, ref):
        assert out.shape == ref.shape
        # Only the tiny excitation MLP touches the MXU; tolerance covers default-precision
        # (bf16-pass) f32 dots there. Everything else is exact f32.
        max_err = float(jnp.max(jnp.abs(out - ref)))
        assert bool(jnp.allclose(out, ref, atol=1e-2, rtol=1e-2)), max_err

    # Case 1: fused single-pass path (per-batch slab fits VMEM).
    k1, k2 = jax.random.split(key)
    x = jax.random.normal(k1, (2, 64, 16, 16), jnp.float32)
    params = init_params(k2, 64, 16)
    out = jax.block_until_ready(channel_attention_forward(params, x))
    check(out, reference(params, x))

    # Case 2: tiled two-pass path with accumulate/finalize across 2 spatial tiles.
    out = jax.block_until_ready(
        channel_attention_forward(params, x, spatial_tile=128, force_tiled=True))
    check(out, reference(params, x))

    # Case 3: tiled path, H*W not a multiple of 128 (padding + in-kernel max mask).
    # All-negative input would expose an unmasked zero-padded max.
    k3, k4 = jax.random.split(k1)
    x3 = -jnp.abs(jax.random.normal(k3, (2, 32, 10, 10), jnp.float32)) - 1.0
    params3 = init_params(k4, 32, 16)
    out3 = jax.block_until_ready(channel_attention_forward(params3, x3, force_tiled=True))
    check(out3, reference(params3, x3))

    print("KERNEL_OK")
</pallas_src>

<mosaic_0001>
module attributes {stable_mosaic.version = 11 : i64} {
  func.func @fused_kernel(%arg0: i32, %arg1: memref<1x64x256xf32, #tpu.memory_space<vmem>>, %arg2: memref<4x64xf32, #tpu.memory_space<vmem>>, %arg3: memref<4x1xf32, #tpu.memory_space<vmem>>, %arg4: memref<64x4xf32, #tpu.memory_space<vmem>>, %arg5: memref<64x1xf32, #tpu.memory_space<vmem>>, %arg6: memref<1x64x256xf32, #tpu.memory_space<vmem>>) attributes {dimension_semantics = [#tpu.dimension_semantics<parallel>], iteration_bounds = array<i64: 2>, scalar_prefetch = 0 : i64, scratch_operands = 0 : i64, tpu.core_type = #tpu.core_type<tc>, window_params = [{transform_indices = @transform_0, window_bounds = array<i64: 1, 64, 256>}, {pipeline_mode = #tpu.pipeline_mode<synchronous>, transform_indices = @transform_1, window_bounds = array<i64: 4, 64>}, {pipeline_mode = #tpu.pipeline_mode<synchronous>, transform_indices = @transform_2, window_bounds = array<i64: 4, 1>}, {pipeline_mode = #tpu.pipeline_mode<synchronous>, transform_indices = @transform_3, window_bounds = array<i64: 64, 4>}, {pipeline_mode = #tpu.pipeline_mode<synchronous>, transform_indices = @transform_4, window_bounds = array<i64: 64, 1>}, {transform_indices = @transform_5, window_bounds = array<i64: 1, 64, 256>}]} {
    %c0 = arith.constant 0 : index
    %c0_0 = arith.constant 0 : index
    %c0_1 = arith.constant 0 : index
    %0 = vector.load %arg1[%c0, %c0_0, %c0_1] : memref<1x64x256xf32, #tpu.memory_space<vmem>>, vector<1x64x256xf32>
    %1 = vector.shape_cast %0 : vector<1x64x256xf32> to vector<64x256xf32>
    %cst = arith.constant dense<0.000000e+00> : vector<64xf32>
    %2 = vector.multi_reduction <add>, %1, %cst [1] : vector<64x256xf32> to vector<64xf32>
    %3 = vector.shape_cast %2 : vector<64xf32> to vector<64x1xf32>
    %cst_2 = arith.constant 3.906250e-03 : f32
    %4 = vector.broadcast %cst_2 : f32 to vector<64x1xf32>
    %5 = arith.mulf %3, %4 : vector<64x1xf32>
    %cst_3 = arith.constant dense<0xFF800000> : vector<64xf32>
    %6 = vector.multi_reduction <maximumf>, %1, %cst_3 [1] : vector<64x256xf32> to vector<64xf32>
    %7 = vector.shape_cast %6 : vector<64xf32> to vector<64x1xf32>
    %8 = tpu.iota {dimensions = array<i32: 1>} : vector<1x2xi32>
    %c0_i32 = arith.constant 0 : i32
    %9 = vector.broadcast %c0_i32 : i32 to vector<1x2xi32>
    %10 = arith.cmpi eq, %8, %9 : vector<1x2xi32>
    %11 = vector.shape_cast %10 : vector<1x2xi1> to vector<1x2xi1>
    %12 = vector.broadcast %11 : vector<1x2xi1> to vector<64x2xi1>
    %13 = vector.shape_cast %5 : vector<64x1xf32> to vector<64x1xf32>
    %14 = vector.broadcast %13 : vector<64x1xf32> to vector<64x2xf32>
    %15 = vector.shape_cast %7 : vector<64x1xf32> to vector<64x1xf32>
    %16 = vector.broadcast %15 : vector<64x1xf32> to vector<64x2xf32>
    %17 = arith.select %12, %14, %16 : vector<64x2xi1>, vector<64x2xf32>
    %c0_4 = arith.constant 0 : index
    %c0_5 = arith.constant 0 : index
    %18 = vector.load %arg2[%c0_4, %c0_5] : memref<4x64xf32, #tpu.memory_space<vmem>>, vector<4x64xf32>
    %cst_6 = arith.constant dense<0.000000e+00> : vector<4x2xf32>
    %19 = tpu.matmul %18, %17, %cst_6 {dimension_numbers = #tpu.dot_dimension_numbers<[1], [0], [0], [1], [0, 0, 1, 1], [], []>} : vector<4x64xf32>, vector<64x2xf32>, vector<4x2xf32> -> vector<4x2xf32>
    %c0_7 = arith.constant 0 : index
    %c0_8 = arith.constant 0 : index
    %20 = vector.load %arg3[%c0_7, %c0_8] : memref<4x1xf32, #tpu.memory_space<vmem>>, vector<4x1xf32>
    %21 = vector.broadcast %20 : vector<4x1xf32> to vector<4x2xf32>
    %22 = arith.addf %19, %21 : vector<4x2xf32>
    %cst_9 = arith.constant 0.000000e+00 : f32
    %23 = vector.broadcast %cst_9 : f32 to vector<4x2xf32>
    %24 = arith.maximumf %22, %23 : vector<4x2xf32>
    %c0_10 = arith.constant 0 : index
    %c0_11 = arith.constant 0 : index
    %25 = vector.load %arg4[%c0_10, %c0_11] : memref<64x4xf32, #tpu.memory_space<vmem>>, vector<64x4xf32>
    %cst_12 = arith.constant dense<0.000000e+00> : vector<64x2xf32>
    %26 = tpu.matmul %25, %24, %cst_12 {dimension_numbers = #tpu.dot_dimension_numbers<[1], [0], [0], [1], [0, 0, 1, 1], [], []>} : vector<64x4xf32>, vector<4x2xf32>, vector<64x2xf32> -> vector<64x2xf32>
    %c0_13 = arith.constant 0 : index
    %c0_14 = arith.constant 0 : index
    %27 = vector.load %arg5[%c0_13, %c0_14] : memref<64x1xf32, #tpu.memory_space<vmem>>, vector<64x1xf32>
    %28 = vector.broadcast %27 : vector<64x1xf32> to vector<64x2xf32>
    %29 = arith.addf %26, %28 : vector<64x2xf32>
    %30 = vector.extract_strided_slice %29 {offsets = [0, 0], sizes = [64, 1], strides = [1, 1]} : vector<64x2xf32> to vector<64x1xf32>
    %31 = vector.extract_strided_slice %29 {offsets = [0, 1], sizes = [64, 1], strides = [1, 1]} : vector<64x2xf32> to vector<64x1xf32>
    %32 = arith.addf %30, %31 : vector<64x1xf32>
    %33 = arith.negf %32 : vector<64x1xf32>
    %34 = math.exp %33 : vector<64x1xf32>
    %cst_15 = arith.constant 1.000000e+00 : f32
    %35 = vector.broadcast %cst_15 : f32 to vector<64x1xf32>
    %36 = arith.addf %35, %34 : vector<64x1xf32>
    %37 = arith.divf %35, %36 : vector<64x1xf32>
    %38 = vector.broadcast %37 : vector<64x1xf32> to vector<64x256xf32>
    %39 = arith.mulf %1, %38 : vector<64x256xf32>
    %40 = vector.shape_cast %39 : vector<64x256xf32> to vector<1x64x256xf32>
    %c0_16 = arith.constant 0 : index
    %c0_17 = arith.constant 0 : index
    %c0_18 = arith.constant 0 : index
    %41 = vector.load %arg6[%c0_16, %c0_17, %c0_18] : memref<1x64x256xf32, #tpu.memory_space<vmem>>, vector<1x64x256xf32>
    tpu.vector_store %arg6[%c0_16, %c0_17, %c0_18], %40 {strides = array<i32>} : memref<1x64x256xf32, #tpu.memory_space<vmem>>, vector<1x64x256xf32>,
    return
  }
  func.func @transform_0(%arg0: i32) -> (i32, i32, i32) {
    %c0_i32 = arith.constant 0 : i32
    %c0_i32_0 = arith.constant 0 : i32
    %c0_i32_1 = arith.constant 0 : i32
    return %arg0, %c0_i32, %c0_i32_0 : i32, i32, i32
  }
  func.func @transform_1(%arg0: i32) -> (i32, i32) {
    %c0_i32 = arith.constant 0 : i32
    %c0_i32_0 = arith.constant 0 : i32
    %c0_i32_1 = arith.constant 0 : i32
    return %c0_i32, %c0_i32_0 : i32, i32
  }
  func.func @transform_2(%arg0: i32) -> (i32, i32) {
    %c0_i32 = arith.constant 0 : i32
    %c0_i32_0 = arith.constant 0 : i32
    %c0_i32_1 = arith.constant 0 : i32
    return %c0_i32, %c0_i32_0 : i32, i32
  }
  func.func @transform_3(%arg0: i32) -> (i32, i32) {
    %c0_i32 = arith.constant 0 : i32
    %c0_i32_0 = arith.constant 0 : i32
    %c0_i32_1 = arith.constant 0 : i32
    return %c0_i32, %c0_i32_0 : i32, i32
  }
  func.func @transform_4(%arg0: i32) -> (i32, i32) {
    %c0_i32 = arith.constant 0 : i32
    %c0_i32_0 = arith.constant 0 : i32
    %c0_i32_1 = arith.constant 0 : i32
    return %c0_i32, %c0_i32_0 : i32, i32
  }
  func.func @transform_5(%arg0: i32) -> (i32, i32, i32) {
    %c0_i32 = arith.constant 0 : i32
    %c0_i32_0 = arith.constant 0 : i32
    %c0_i32_1 = arith.constant 0 : i32
    return %arg0, %c0_i32, %c0_i32_0 : i32, i32, i32
  }
}

</mosaic_0001>

<bundles_post_ra>
// kernel: channel_attention_forward.1
= control target key start
LH: loop header
LB: loop body
LE: loop exit
PB: predicated region body
PF: predicated region fallthrough
CT: control target
= control target key end

     0   :  { %s981_s18 = smov 0   ;;  %s1191_s0 = inlined_call_operand.vmem [shape: f32[2,64,256], index: 0, kind: input, shape index: {}]   ;;  %s1192_s1 = inlined_call_operand.vmem [shape: f32[4,64], index: 1, kind: input, shape index: {}]   ;;  %s1193_s2 = inlined_call_operand.vmem [shape: f32[4,1], index: 2, kind: input, shape index: {}]   ;;  %s1194_s3 = inlined_call_operand.vmem [shape: f32[64,4], index: 3, kind: input, shape index: {}]   ;;  %s1195_s4 = inlined_call_operand.vmem [shape: f32[64,1], index: 4, kind: input, shape index: {}]   ;;  %s1196_s5 = inlined_call_operand.vmem [shape: f32[2,64,256], index: 5, kind: output, shape index: {}]  }
   0x1 LB: > { %s797_s19 = sadd.s32 4294967295, %s944_s18   ;;  %p801_p0 = scmp.ge.s32.totalorder %s944_s18, 1  ;;  %s944_s18 = sphi %s981_s18, %s15_s18  }
   0x2   : > { %p187_p1 = scmp.lt.s32.totalorder %s944_s18, 3 }
   0x4   : > { %p188_p2 = pnand %p801_p0, %p187_p1 }
   0x5   : > { %p215_p3 = scmp.lt.s32.totalorder (!%p188_p2), %s797_s19, 1  ;;  %v946_v30 = vmov (!%p188_p2), 0.0|0.0   ;;  %vm947_vm0 = vmmov (!%p188_p2), 0   ;;  %v948_v33 = vmov (!%p188_p2), 0.0   ;;  %v311_v34 = vld [vmem:[%s1193_s2] sm:$0xf] (!%p188_p2)  ;;  %v297_v36 = vlaneseq (!%p188_p2) }
   0x6   : > { %191 = sbr.rel (%p188_p2) target bundleno = 916 (0x394), region = 40  ;;  %879 = vmatprep.subr.bf16.mxu0 (!%p188_p2), %v946_v30  ;;  %862 = vmatprep.mubr.msk.f32.mxu0 (!%p188_p2), %vm947_vm0, %v948_v33  ;;  %v949_v35 = vmov (!%p188_p2), 0   ;;  %vm317_vm2 = vcmask (!%p188_p2), 523264   ;;  %vm448_vm3 = vcmask (!%p188_p2), 31744   ;;  %v405_v33 = vld [vmem:[%s1195_s4 + $0x28] sm:$0xff] (!%p188_p2)  ;;  %vm473_vm4 = vcmask (!%p188_p2), 1043456  }
   0x7   : > { %904 = vset.pattern.permute.xlu0 (!%p188_p2), %v949_v35  ;;  %905 = vset.pattern.permute.xlu1 (!%p188_p2), %v949_v35  ;;  %v298_v39 = vand.u32 (!%p188_p2), 127, %v297_v36  ;;  %v407_v35 = vld [vmem:[%s1195_s4 + $0x38] sm:$0xff] (!%p188_p2)  ;;  %s950_s13 = smov (!%p188_p2), 127  }
   0x9   : > { %vm299_vm1 = vcmp.eq.s32.totalorder (!%p188_p2), %v298_v39, 0 }
   0xd   : > { %s1198_s19 = smov (!%p215_p3, %s797_s19), 1 }
   0xe   : > { %s826_s20 = sshll.u32 %s1198_s19, 7 }
   0xf   : > { %s997_s23 = scalar_lea.vmem %s1191_s0, %s826_s20  ;;  %s1154_s16 = scalar_lea.vmem %s1196_s5, %s826_s20 }
  0x10   : > { %v1000_v0 = vld [vmem:[%s997_s23] sm:$0xff]  ;;  %v1003_v1 = vld [vmem:[%s997_s23 + $0x8] sm:$0xff]  ;;  %v1006_v2 = vld [vmem:[%s997_s23 + $0x10] sm:$0xff] }
  0x11   : > { %v273_v3 = vmax.f32 %v1000_v0, %v1003_v1  ;;  %v241_v4 = vadd.f32 %v1003_v1, %v1000_v0  ;;  %v1013_v5 = vld [vmem:[%s997_s23 + $0x18] sm:$0xff]  ;;  %v1020_v8 = vld [vmem:[%s997_s23 + $0x30] sm:$0xff]  ;;  %v1026_v10 = vld [vmem:[%s997_s23 + $0x20] sm:$0xff] }
  0x12   : > { %v276_v6 = vmax.f32 %v1006_v2, %v1013_v5  ;;  %v244_v7 = vadd.f32 %v1013_v5, %v1006_v2  ;;  %v1023_v9 = vld [vmem:[%s997_s23 + $0x38] sm:$0xff]  ;;  %v1029_v11 = vld [vmem:[%s997_s23 + $0x28] sm:$0xff]  ;;  %v1040_v16 = vld [vmem:[%s997_s23 + $0x50] sm:$0xff] }
  0x13   : > { %274 = vmax.xlane.f32.xlu1 %v273_v3  ;;  %242 = vadd.xlane.f32.xlu0 %v241_v4  ;;  %v250_v12 = vadd.f32 %v1023_v9, %v1020_v8  ;;  %v247_v13 = vadd.f32 %v1029_v11, %v1026_v10  ;;  %v282_v14 = vmax.f32 %v1020_v8, %v1023_v9  ;;  %v1043_v17 = vld [vmem:[%s997_s23 + $0x58] sm:$0xff]  ;;  %v1046_v18 = vld [vmem:[%s997_s23 + $0x40] sm:$0xff]  ;;  %v1049_v19 = vld [vmem:[%s997_s23 + $0x48] sm:$0xff] }
  0x14   : > { %v279_v15 = vmax.f32 %v1026_v10, %v1029_v11  ;;  %v256_v20 = vadd.f32 %v1043_v17, %v1040_v16  ;;  %v253_v21 = vadd.f32 %v1049_v19, %v1046_v18  ;;  %v288_v22 = vmax.f32 %v1040_v16, %v1043_v17  ;;  %v1060_v24 = vld [vmem:[%s997_s23 + $0x70] sm:$0xff]  ;;  %v1063_v25 = vld [vmem:[%s997_s23 + $0x78] sm:$0xff]  ;;  %v1066_v26 = vld [vmem:[%s997_s23 + $0x60] sm:$0xff] }
  0x15   : > { %v285_v23 = vmax.f32 %v1046_v18, %v1049_v19  ;;  %v1069_v27 = vld [vmem:[%s997_s23 + $0x68] sm:$0xff]  ;;  %v262_v28 = vadd.f32 %v1063_v25, %v1060_v24  ;;  %v294_v31 = vmax.f32 %v1060_v24, %v1063_v25 }
  0x16   : > { %v259_v29 = vadd.f32 %v1069_v27, %v1066_v26  ;;  %v291_v32 = vmax.f32 %v1066_v26, %v1069_v27 }
  0x17   : > { %277 = vmax.xlane.f32.xlu1 %v276_v6  ;;  %245 = vadd.xlane.f32.xlu0 %v244_v7 }
  0x1b   : > { %251 = vadd.xlane.f32.xlu1 %v250_v12  ;;  %248 = vadd.xlane.f32.xlu0 %v247_v13 }
  0x1f   : > { %283 = vmax.xlane.f32.xlu1 %v282_v14  ;;  %280 = vmax.xlane.f32.xlu0 %v279_v15 }
  0x23   : > { %257 = vadd.xlane.f32.xlu1 %v256_v20  ;;  %254 = vadd.xlane.f32.xlu0 %v253_v21 }
  0x27   : > { %289 = vmax.xlane.f32.xlu1 %v288_v22  ;;  %286 = vmax.xlane.f32.xlu0 %v285_v23  ;;  %v310_v22 = vld [vmem:[%s1192_s1] sm:$0xf] }
  0x28   : > { %v392_v23 = vld [vmem:[%s1194_s3] sm:$0xff] }
  0x29   : > { %867 = vmatprep.mubr.msk.f32.mxu1 %vm448_vm3, %v392_v23 }
  0x2b   : > { %263 = vadd.xlane.f32.xlu1 %v262_v28  ;;  %260 = vadd.xlane.f32.xlu0 %v259_v29  ;;  %v400_v28 = vld [vmem:[%s1195_s4] sm:$0xff]  ;;  %v401_v29 = vld [vmem:[%s1195_s4 + $0x8] sm:$0xff] }
  0x2f   : > { %295 = vmax.xlane.f32.xlu1 %v294_v31  ;;  %292 = vmax.xlane.f32.xlu0 %v291_v32  ;;  %v403_v31 = vld [vmem:[%s1195_s4 + $0x18] sm:$0xff]  ;;  %v404_v32 = vld [vmem:[%s1195_s4 + $0x20] sm:$0xff] }
  0x40   : > { %410 = vperm.xlu1 %905, %v400_v28  }
  0x44   : > { %415 = vperm.xlu1 %905, %v401_v29  }
  0x45   : > { %314 = vperm.xlu0 %904, %v311_v34   ;;  %v406_v34 = vld [vmem:[%s1195_s4 + $0x30] sm:$0xff] }
  0xa0   : > { %v275_v37 = vpop.xlane.xlu1 %274  ;;  %v243_v38 = vpop.xlane.xlu0 %242 }
  0xa1   : > { %v265_v40 = vmul.f32 0.00390625, %v243_v38 }
  0xa3   : > { %v302_v44 = vsel %vm299_vm1, %v265_v40, %v275_v37 }
  0xa4   : > { %v278_v41 = vpop.xlane.xlu1 %277  ;;  %v246_v42 = vpop.xlane.xlu0 %245 }
  0xa5   : > { %v266_v43 = vmul.f32 0.00390625, %v246_v42  ;;  %v394_v42 = vld [vmem:[%s1194_s3 + $0x10] sm:$0xff] }
  0xa7   : > { %v303_v45 = vsel %vm299_vm1, %v266_v43, %v278_v41  ;;  %v393_v41 = vld [vmem:[%s1194_s3 + $0x8] sm:$0xff]  ;;  %v395_v43 = vld [vmem:[%s1194_s3 + $0x18] sm:$0xff] }
  0xa8   : > { %v252_v46 = vpop.xlane.xlu1 %251  ;;  %v249_v47 = vpop.xlane.xlu0 %248  ;;  %v880_v48 = vpack.c.bf16 %v303_v45, %v302_v44  ;;  %v396_v44 = vld [vmem:[%s1194_s3 + $0x20] sm:$0xff]  ;;  %v397_v45 = vld [vmem:[%s1194_s3 + $0x28] sm:$0xff] }
  0xa9   : > { %v268_v49 = vmul.f32 0.00390625, %v252_v46  ;;  %v267_v50 = vmul.f32 0.00390625, %v249_v47  ;;  %v398_v46 = vld [vmem:[%s1194_s3 + $0x30] sm:$0xff]  ;;  %v399_v47 = vld [vmem:[%s1194_s3 + $0x38] sm:$0xff] }
  0xaa   : > { %881 = vmatpush3.bf16.msra.mxu0 %v880_v48 }
  0xab   : > { %882 = vmatprep.subr.bf16.mxu0 %v946_v30 }
  0xac   : > { %v284_v51 = vpop.xlane.xlu1 %283  ;;  %v281_v52 = vpop.xlane.xlu0 %280 }
  0xad   : > { %v305_v53 = vsel %vm299_vm1, %v268_v49, %v284_v51  ;;  %v304_v54 = vsel %vm299_vm1, %v267_v50, %v281_v52 }
  0xae   : > { %v883_v55 = vpack.c.bf16 %v305_v53, %v304_v54 }
  0xb0   : > { %v258_v56 = vpop.xlane.xlu1 %257  ;;  %884 = vmatpush3.bf16.msra.mxu0 %v883_v55  ;;  %v255_v57 = vpop.xlane.xlu0 %254 }
  0xb1   : > { %885 = vmatprep.subr.bf16.mxu0 %v946_v30  ;;  %v270_v58 = vmul.f32 0.00390625, %v258_v56  ;;  %v269_v59 = vmul.f32 0.00390625, %v255_v57 }
  0xb4   : > { %v290_v60 = vpop.xlane.xlu1 %289  ;;  %v287_v61 = vpop.xlane.xlu0 %286 }
  0xb5   : > { %v307_v62 = vsel %vm299_vm1, %v270_v58, %v290_v60  ;;  %v306_v63 = vsel %vm299_vm1, %v269_v59, %v287_v61 }
  0xb6   : > { %v886_v3 = vpack.c.bf16 %v307_v62, %v306_v63 }
  0xb8   : > { %v264_v4 = vpop.xlane.xlu1 %263  ;;  %887 = vmatpush3.bf16.msra.mxu0 %v886_v3  ;;  %v261_v6 = vpop.xlane.xlu0 %260 }
  0xb9   : > { %888 = vmatprep.subr.bf16.mxu0 %v946_v30  ;;  %v272_v7 = vmul.f32 0.00390625, %v264_v4  ;;  %v271_v12 = vmul.f32 0.00390625, %v261_v6  ;;  %v402_v30 = vld [vmem:[%s1195_s4 + $0x10] sm:$0xff] }
  0xba   : > { %420 = vperm.xlu1 %905, %v402_v30  }
  0xbc   : > { %v296_v13 = vpop.xlane.xlu1 %295  ;;  %v293_v14 = vpop.xlane.xlu0 %292 }
  0xbd   : > { %v309_v15 = vsel %vm299_vm1, %v272_v7, %v296_v13  ;;  %v308_v20 = vsel %vm299_vm1, %v271_v12, %v293_v14 }
  0xbe   : > { %v889_v21 = vpack.c.bf16 %v309_v15, %v308_v20  ;;  %425 = vperm.xlu1 %905, %v403_v31  }
  0xc0   : > { %890 = vmatpush3.bf16.msra.mxu0 %v889_v21  ;;  %v411_v48 = vpop.permute.xlu1 %410 }
  0xc2   : > { %430 = vperm.xlu1 %905, %v404_v32  }
  0xc3   : > { %863 = vmatmul.mubr.msk.f32.vlgmr.msra.gmra.mrb[0].mxu0 %vm317_vm2, %v310_v22 }
  0xc4   : > { %v315_v36 = vpop.permute.xlu0 %314  ;;  %v416_v49 = vpop.permute.xlu1 %415 }
  0xc6   : > { %435 = vperm.xlu1 %905, %v405_v33  }
  0xca   : > { %440 = vperm.xlu1 %905, %v406_v34  }
  0xce   : > { %445 = vperm.xlu1 %905, %v407_v35  }
 0x139   : > { %v421_v50 = vpop.permute.xlu1 %420 }
 0x13d   : > { %v426_v51 = vpop.permute.xlu1 %425 }
 0x141   : > { %v431_v52 = vpop.permute.xlu1 %430 }
 0x145   : > { %v436_v53 = vpop.permute.xlu1 %435 }
 0x149   : > { %v441_v61 = vpop.permute.xlu1 %440 }
 0x14d   : > { %v446_v7 = vpop.permute.xlu1 %445 }
 0x196   : > { %v387_v37 = vpop.f32.mrb[0].mxu0 }
 0x197   : > { %v388_v38 = vadd.f32 %v387_v37, %v315_v36  ;;  %v864_v39 = vpop.f32.mrb[1].mxu0 }
 0x199   : > { %v391_v40 = vmax.f32 %v388_v38, 0.0 }
 0x19b   : > { %865 = vmatprep.subr.msk.mxu1 %vm473_vm4, %v391_v40 }
 0x19c   : > { %866 = vmatpush3.msk.msra.mxu1 %vm473_vm4, %v391_v40 }
 0x19d   : > { %868 = vmatmul.mubr.msk.f32.vlgmr.msra.gmra.mrb[0].mxu1 %vm448_vm3, %v393_v41 }
 0x19e   : > { %870 = vmatprep.mubr.msk.f32.mxu1 %vm448_vm3, %v394_v42 }
 0x1a1   : > { %871 = vmatmul.mubr.msk.f32.gmra.mrb[2].mxu1 %vm448_vm3, %v395_v43 }
 0x1a2   : > { %873 = vmatprep.mubr.msk.f32.mxu1 %vm448_vm3, %v396_v44 }
 0x1a5   : > { %874 = vmatmul.mubr.msk.f32.gmra.mrb[4].mxu1 %vm448_vm3, %v397_v45 }
 0x1a6   : > { %876 = vmatprep.mubr.msk.f32.mxu1 %vm448_vm3, %v398_v46 }
 0x1a9   : > { %877 = vmatmul.mubr.msk.f32.gmra.mrb[6].mxu1 %vm448_vm3, %v399_v47 }
 0x270   : > { %v869_v54 = vpop.f32.mrb[0].mxu1 }
 0x271   : > { %v549_v55 = vadd.f32 %v869_v54, %v416_v49  ;;  %v543_v56 = vpop.f32.mrb[1].mxu1 }
 0x272   : > { %v544_v57 = vadd.f32 %v543_v56, %v411_v48 }
 0x273   : > { %592 = vrot.lane.b32.xlu1 %v549_v55, %s950_s13 }
 0x274   : > { %v872_v58 = vpop.f32.mrb[2].mxu1  ;;  %590 = vrot.lane.b32.xlu0 %v544_v57, %s950_s13 }
 0x275   : > { %v559_v59 = vadd.f32 %v872_v58, %v426_v51  ;;  %v553_v60 = vpop.f32.mrb[3].mxu1 }
 0x276   : > { %v554_v62 = vadd.f32 %v553_v60, %v421_v50 }
 0x277   : > { %596 = vrot.lane.b32.xlu1 %v559_v59, %s950_s13 }
 0x278   : > { %v875_v63 = vpop.f32.mrb[4].mxu1  ;;  %594 = vrot.lane.b32.xlu0 %v554_v62, %s950_s13 }
 0x279   : > { %v569_v3 = vadd.f32 %v875_v63, %v436_v53  ;;  %v563_v4 = vpop.f32.mrb[5].mxu1 }
 0x27a   : > { %v564_v6 = vadd.f32 %v563_v4, %v431_v52 }
 0x27b   : > { %600 = vrot.lane.b32.xlu1 %v569_v3, %s950_s13 }
 0x27c   : > { %v878_v12 = vpop.f32.mrb[6].mxu1  ;;  %598 = vrot.lane.b32.xlu0 %v564_v6, %s950_s13 }
 0x27d   : > { %v579_v13 = vadd.f32 %v878_v12, %v446_v7  ;;  %v573_v14 = vpop.f32.mrb[7].mxu1 }
 0x27e   : > { %v574_v15 = vadd.f32 %v573_v14, %v441_v61 }
 0x27f   : > { %604 = vrot.lane.b32.xlu1 %v579_v13, %s950_s13 }
 0x280   : > { %602 = vrot.lane.b32.xlu0 %v574_v15, %s950_s13 }
 0x2e5   : > { %v593_v20 = vpop.permute.xlu1 %592 }
 0x2e6   : > { %v615_v21 = vadd.f32 %v593_v20, %v549_v55  ;;  %v591_v22 = vpop.permute.xlu0 %590 }
 0x2e7   : > { %v614_v23 = vadd.f32 %v591_v22, %v544_v57 }
 0x2e8   : > { %v817_v28 = vmul.f32 -1.442695, %v615_v21 }
 0x2e9   : > { %v816_v29 = vmul.f32 -1.442695, %v614_v23  ;;  %v597_v30 = vpop.permute.xlu1 %596 }
 0x2ea   : > { %906 = vpow2.f32 %v817_v28  ;;  %v617_v31 = vadd.f32 %v597_v30, %v559_v59  ;;  %v595_v32 = vpop.permute.xlu0 %594 }
 0x2eb   : > { %908 = vpow2.f32 %v816_v29  ;;  %v616_v33 = vadd.f32 %v595_v32, %v554_v62 }
 0x2ec   : > { %v819_v34 = vmul.f32 -1.442695, %v617_v31 }
 0x2ed   : > { %v818_v35 = vmul.f32 -1.442695, %v616_v33  ;;  %v601_v36 = vpop.permute.xlu1 %600 }
 0x2ee   : > { %910 = vpow2.f32 %v819_v34  ;;  %v619_v37 = vadd.f32 %v601_v36, %v569_v3  ;;  %v599_v38 = vpop.permute.xlu0 %598 }
 0x2ef   : > { %912 = vpow2.f32 %v818_v35  ;;  %v618_v39 = vadd.f32 %v599_v38, %v564_v6 }
 0x2f0   : > { %v821_v40 = vmul.f32 -1.442695, %v619_v37 }
 0x2f1   : > { %v820_v41 = vmul.f32 -1.442695, %v618_v39  ;;  %v605_v42 = vpop.permute.xlu1 %604 }
 0x2f2   : > { %914 = vpow2.f32 %v821_v40  ;;  %v621_v43 = vadd.f32 %v605_v42, %v579_v13  ;;  %v603_v44 = vpop.permute.xlu0 %602 }
 0x2f3   : > { %916 = vpow2.f32 %v820_v41  ;;  %v620_v45 = vadd.f32 %v603_v44, %v574_v15 }
 0x2f4   : > { %v907_v46 = vpop.eup %906  ;;  %v823_v47 = vmul.f32 -1.442695, %v621_v43 }
 0x2f5   : > { %v909_v48 = vpop.eup %908  ;;  %v647_v49 = vadd.f32 1.0, %v907_v46  ;;  %v822_v50 = vmul.f32 -1.442695, %v620_v45 }
 0x2f6   : > { %v646_v51 = vadd.f32 1.0, %v909_v48  ;;  %918 = vpow2.f32 %v823_v47 }
 0x2f7   : > { %920 = vrcp.f32 %v647_v49 }
 0x2f8   : > { %v911_v52 = vpop.eup %910  ;;  %922 = vrcp.f32 %v646_v51 }
 0x2f9   : > { %v913_v53 = vpop.eup %912  ;;  %v649_v54 = vadd.f32 1.0, %v911_v52  ;;  %924 = vpow2.f32 %v822_v50 }
 0x2fa   : > { %v648_v55 = vadd.f32 1.0, %v913_v53 }
 0x2fb   : > { %926 = vrcp.f32 %v649_v54 }
 0x2fc   : > { %v915_v56 = vpop.eup %914  ;;  %928 = vrcp.f32 %v648_v55 }
 0x2fd   : > { %v917_v57 = vpop.eup %916  ;;  %v651_v58 = vadd.f32 1.0, %v915_v56 }
 0x2fe   : > { %v650_v59 = vadd.f32 1.0, %v917_v57 }
 0x2ff   : > { %930 = vrcp.f32 %v651_v58 }
 0x300   : > { %v919_v60 = vpop.eup %918  ;;  %932 = vrcp.f32 %v650_v59 }
 0x301   : > { %v921_v61 = vpop.eup %920  ;;  %v653_v62 = vadd.f32 1.0, %v919_v60 }
 0x302   : > { %v923_v63 = vpop.eup %922  ;;  %677 = vperm.xlu1 %905, %v921_v61  }
 0x303   : > { %v925_v3 = vpop.eup %924  ;;  %934 = vrcp.f32 %v653_v62  ;;  %672 = vperm.xlu0 %904, %v923_v63  }
 0x304   : > { %v652_v4 = vadd.f32 1.0, %v925_v3 }
 0x305   : > { %v927_v6 = vpop.eup %926 }
 0x306   : > { %v929_v7 = vpop.eup %928  ;;  %936 = vrcp.f32 %v652_v4  ;;  %687 = vperm.xlu1 %905, %v927_v6  }
 0x307   : > { %682 = vperm.xlu0 %904, %v929_v7  }
 0x309   : > { %v931_v12 = vpop.eup %930 }
 0x30a   : > { %v933_v13 = vpop.eup %932  ;;  %697 = vperm.xlu1 %905, %v931_v12  }
 0x30b   : > { %692 = vperm.xlu0 %904, %v933_v13  }
 0x30d   : > { %v935_v14 = vpop.eup %934 }
 0x30e   : > { %707 = vperm.xlu1 %905, %v935_v14  }
 0x310   : > { %v937_v15 = vpop.eup %936 }
 0x311   : > { %702 = vperm.xlu0 %904, %v937_v15  }
 0x381   : > { %v678_v20 = vpop.permute.xlu1 %677 }
 0x382   : > { %v712_v21 = vmul.f32 %v678_v20, %v1006_v2  ;;  %v713_v22 = vmul.f32 %v678_v20, %v1013_v5  ;;  %v673_v23 = vpop.permute.xlu0 %672 }
 0x383   : > { %v710_v28 = vmul.f32 %v673_v23, %v1000_v0  ;;  %v711_v29 = vmul.f32 %v673_v23, %v1003_v1 }
 0x384   : > { %728 = vst [vmem:[%s1154_s16 + $0x10] sm:$0xff] %v712_v21  ;;  %729 = vst [vmem:[%s1154_s16 + $0x18] sm:$0xff] %v713_v22 }
 0x385   : > { %726 = vst [vmem:[%s1154_s16] sm:$0xff] %v710_v28  ;;  %727 = vst [vmem:[%s1154_s16 + $0x8] sm:$0xff] %v711_v29  ;;  %v688_v30 = vpop.permute.xlu1 %687 }
 0x386   : > { %v716_v31 = vmul.f32 %v688_v30, %v1020_v8  ;;  %v717_v2 = vmul.f32 %v688_v30, %v1023_v9  ;;  %v683_v5 = vpop.permute.xlu0 %682 }
 0x387   : > { %v714_v32 = vmul.f32 %v683_v5, %v1026_v10  ;;  %v715_v0 = vmul.f32 %v683_v5, %v1029_v11 }
 0x388   : > { %732 = vst [vmem:[%s1154_s16 + $0x30] sm:$0xff] %v716_v31  ;;  %733 = vst [vmem:[%s1154_s16 + $0x38] sm:$0xff] %v717_v2 }
 0x389   : > { %730 = vst [vmem:[%s1154_s16 + $0x20] sm:$0xff] %v714_v32  ;;  %731 = vst [vmem:[%s1154_s16 + $0x28] sm:$0xff] %v715_v0  ;;  %v698_v1 = vpop.permute.xlu1 %697 }
 0x38a   : > { %v720_v33 = vmul.f32 %v698_v1, %v1040_v16  ;;  %v721_v8 = vmul.f32 %v698_v1, %v1043_v17  ;;  %v693_v9 = vpop.permute.xlu0 %692 }
 0x38b   : > { %v718_v34 = vmul.f32 %v693_v9, %v1046_v18  ;;  %v719_v10 = vmul.f32 %v693_v9, %v1049_v19 }
 0x38c   : > { %736 = vst [vmem:[%s1154_s16 + $0x50] sm:$0xff] %v720_v33  ;;  %737 = vst [vmem:[%s1154_s16 + $0x58] sm:$0xff] %v721_v8 }
 0x38d   : > { %734 = vst [vmem:[%s1154_s16 + $0x40] sm:$0xff] %v718_v34  ;;  %735 = vst [vmem:[%s1154_s16 + $0x48] sm:$0xff] %v719_v10  ;;  %v708_v11 = vpop.permute.xlu1 %707 }
 0x38e   : > { %v724_v35 = vmul.f32 %v708_v11, %v1060_v24  ;;  %v725_v36 = vmul.f32 %v708_v11, %v1063_v25 }
 0x390   : > { %740 = vst [vmem:[%s1154_s16 + $0x70] sm:$0xff] %v724_v35  ;;  %741 = vst [vmem:[%s1154_s16 + $0x78] sm:$0xff] %v725_v36  ;;  %v703_v16 = vpop.permute.xlu0 %702 }
 0x391   : > { %v722_v17 = vmul.f32 %v703_v16, %v1066_v26  ;;  %v723_v37 = vmul.f32 %v703_v16, %v1069_v27 }
 0x393   : > { %738 = vst [vmem:[%s1154_s16 + $0x60] sm:$0xff] %v722_v17  ;;  %739 = vst [vmem:[%s1154_s16 + $0x68] sm:$0xff] %v723_v37 }
 0x394 PF: > { %s15_s18 = sadd.s32 1, %s944_s18  }
 0x395   : > { %p12_p4 = scmp.ge.s32.totalorder %s15_s18, 4  }
 0x397   :  { %14 = sbr.rel (!%p12_p4) target bundleno = 1 (0x1), region = 70 }

</bundles_post_ra>
